<compile_context>
chip_gen: v6e
topology: v6e:2x2x1
jax: 0.10.0
libtpu: 0.0.40
codegen_flags: <defaults>
</compile_context>

<pallas_src>
import functools

import jax
import jax.numpy as jnp
from jax.experimental import pallas as pl
from jax.experimental.pallas import tpu as pltpu

BN_EPS = 1e-5


def _bn_conv1x1_relu_kernel(x_ref, halo_ref, w_ref, b_ref, border_ref, o_ref, *, H):
    """One (batch, row-tile) step of the fused BN + 1x1 conv(pad=1) + ReLU.

    x_ref:      [Cin, TH, W]   input rows  r*TH .. r*TH+TH-1
    halo_ref:   [Cin, 8,  W]   input rows  r*TH-8 .. r*TH-1  (row 7 = r*TH-1)
    w_ref:      [Cout, Cin]    BN-folded conv weight
    b_ref:      [Cout, 1]      BN-folded conv bias (interior pixels)
    border_ref: [Cout, 1]      relu(conv_b): value of conv over the zero padding
    o_ref:      [Cout, TH, W+2]  padded-output rows r*TH .. r*TH+TH-1
    """
    r = pl.program_id(1)
    cin, TH, _ = x_ref.shape
    cout = o_ref.shape[0]

    w = w_ref[...]                          # [Cout, Cin]
    b = b_ref[...]                          # [Cout, 1]
    border = border_ref[...]                # [Cout, 1]

    x = x_ref[...]                          # [Cin, TH, W]
    halo = halo_ref[...]                    # [Cin, 8, W]

    # src[:, t, :] = input row feeding output row r*TH + t  (= input row r*TH+t-1):
    # row 0 comes from the halo (last row of the previous row-block).
    src = jnp.concatenate([halo[:, 7:8, :], x[:, :TH - 1, :]], axis=1)  # [Cin, TH, W]

    # 3 -> 8 channel contraction on the VPU (static unroll over Cin).
    y = w[:, 0:1][:, :, None] * src[0:1]                  # [Cout, TH, W]
    for ci in range(1, cin):
        y = y + w[:, ci:ci + 1][:, :, None] * src[ci:ci + 1]
    y = jnp.maximum(y + b[:, :, None], 0.0)               # bias + relu

    # Output rows outside 1..H (top/bottom conv padding, and the masked tail of
    # a ragged last block) take the border value relu(conv_b).
    out_row = r * TH + jax.lax.broadcasted_iota(jnp.int32, (1, TH, 1), 1)
    interior = jnp.logical_and(out_row >= 1, out_row <= H)
    y = jnp.where(interior, y, border[:, :, None])

    # Left / right zero-padding columns, then one aligned full-block store.
    bcol = jnp.broadcast_to(border[:, :, None], (cout, TH, 1))
    o_ref[...] = jnp.concatenate([bcol, y, bcol], axis=2)  # [Cout, TH, W+2]


def _pick_row_tile(H, W, Cout, n_batch):
    """Row-tile height: multiple of 8, ~1 MiB of output per grid step, while
    keeping >= 4 total grid steps (pipelining + v7x megacore)."""
    TH = 8
    target_out_bytes = 1 << 20
    while True:
        nxt = TH * 2
        if nxt > max(8, H):
            break
        if n_batch * pl.cdiv(H + 2, nxt) < 4:
            break
        if nxt * (W + 2) * 4 * Cout > target_out_bytes:
            break
        TH = nxt
    return TH


def model_forward(x_nchw, gamma, beta, conv_w, conv_b):
    """x_nchw: [N, 3, H, W] -> relu(conv1x1(pad=1, BN_train(x))) as [N, 8, H+2, W+2]."""
    N, Cin, H, W = x_nchw.shape
    Cout = conv_w.shape[0]
    x32 = x_nchw.astype(jnp.float32)

    # --- Training-mode BatchNorm batch stats: single fused pass over x.
    # (E[x^2] - mean^2 can cancel when |mean| >> std; f32 accumulation is plenty
    #  for normalized activations.  Guard var >= 0.)
    cnt = N * H * W
    s1 = jnp.sum(x32, axis=(0, 2, 3))
    s2 = jnp.sum(x32 * x32, axis=(0, 2, 3))
    mean = s1 / cnt
    var = jnp.maximum(s2 / cnt - mean * mean, 0.0)                      # biased

    # --- Fold BN into the 1x1 conv.
    scale = gamma.astype(jnp.float32) * jax.lax.rsqrt(var + BN_EPS)     # [Cin]
    shift = beta.astype(jnp.float32) - mean * scale                     # [Cin]
    w2 = conv_w.reshape(Cout, Cin).astype(jnp.float32)
    w_fold = w2 * scale[None, :]                                        # [Cout, Cin]
    b_fold = conv_b.astype(jnp.float32) + w2 @ shift                    # interior bias
    border = jnp.maximum(conv_b.astype(jnp.float32), 0.0)               # padded-pixel value

    TH = _pick_row_tile(H, W, Cout, N)
    R = pl.cdiv(H + 2, TH)                 # row tiles over the padded output
    max_x_blk = pl.cdiv(H, TH) - 1
    max_halo_blk = pl.cdiv(H, 8) - 1

    def x_map(n, r):
        # Clamp: the last (partial) output tile only needs its halo row.
        return (n, 0, jnp.minimum(r, max_x_blk), 0)

    def halo_map(n, r):
        return (n, 0, jnp.clip(r * (TH // 8) - 1, 0, max_halo_blk), 0)

    kernel = functools.partial(_bn_conv1x1_relu_kernel, H=H)

    return pl.pallas_call(
        kernel,
        out_shape=jax.ShapeDtypeStruct((N, Cout, H + 2, W + 2), jnp.float32),
        grid=(N, R),
        in_specs=[
            pl.BlockSpec((None, Cin, TH, W), x_map),           # main row tile
            pl.BlockSpec((None, Cin, 8, W), halo_map),         # 1-row halo (8-row block)
            pl.BlockSpec((Cout, Cin), lambda n, r: (0, 0)),    # folded W (invariant)
            pl.BlockSpec((Cout, 1), lambda n, r: (0, 0)),      # folded bias (invariant)
            pl.BlockSpec((Cout, 1), lambda n, r: (0, 0)),      # border value (invariant)
        ],
        out_specs=pl.BlockSpec((None, Cout, TH, W + 2), lambda n, r: (n, 0, r, 0)),
        compiler_params=pltpu.CompilerParams(
            dimension_semantics=("parallel", "parallel"),
            vmem_limit_bytes=32 * 1024 * 1024),
        cost_estimate=pl.CostEstimate(
            flops=2 * N * Cin * Cout * H * W,
            bytes_accessed=4 * N * (Cin * H * W + Cout * (H + 2) * (W + 2)),
            transcendentals=0),
    )(x32, x32, w_fold, b_fold.reshape(Cout, 1), border.reshape(Cout, 1))


def _reference(x, gamma, beta, conv_w, conv_b):
    """Pure-JAX reference matching the PyTorch module (training-mode BN)."""
    Cout = conv_w.shape[0]
    Cin = x.shape[1]
    mean = jnp.mean(x, axis=(0, 2, 3), keepdims=True)
    var = jnp.mean(jnp.square(x - mean), axis=(0, 2, 3), keepdims=True)
    xb = (x - mean) * jax.lax.rsqrt(var + BN_EPS)
    xb = xb * gamma[None, :, None, None] + beta[None, :, None, None]
    xb_pad = jnp.pad(xb, ((0, 0), (0, 0), (1, 1), (1, 1)))
    y = jnp.einsum("oc,nchw->nohw", conv_w.reshape(Cout, Cin), xb_pad)
    y = y + conv_b[None, :, None, None]
    return jnp.maximum(y, 0.0)


if __name__ == "__main__":
    key = jax.random.PRNGKey(0)
    k_x, k_g, k_b, k_w, k_cb = jax.random.split(key, 5)

    # Small shapes consistent with the module (module uses 1x3x256x256; shrunk).
    N, Cin, H, W, Cout = 2, 3, 16, 16, 8
    x = jax.random.normal(k_x, (N, Cin, H, W), dtype=jnp.float32)

    bn_gamma = 1.0 + 0.1 * jax.random.normal(k_g, (Cin,), dtype=jnp.float32)
    bn_beta = 0.1 * jax.random.normal(k_b, (Cin,), dtype=jnp.float32)
    conv_w = 0.2 * jax.random.normal(k_w, (Cout, Cin, 1, 1), dtype=jnp.float32)
    conv_b = 0.1 * jax.random.normal(k_cb, (Cout,), dtype=jnp.float32)

    fwd = jax.jit(model_forward)
    out = jax.block_until_ready(fwd(x, bn_gamma, bn_beta, conv_w, conv_b))

    assert out.shape == (N, Cout, H + 2, W + 2), out.shape
    assert out.dtype == jnp.float32
    assert bool(jnp.all(out >= 0.0))  # relu

    ref = jax.block_until_ready(_reference(x, bn_gamma, bn_beta, conv_w, conv_b))
    err = float(jnp.max(jnp.abs(out - ref)))
    assert err < 1e-4, err

    print("KERNEL_OK")
</pallas_src>

<mosaic_0001>
module attributes {stable_mosaic.version = 11 : i64} {
  func.func @_bn_conv1x1_relu_kernel(%arg0: i32, %arg1: i32, %arg2: memref<1x3x16x16xf32, #tpu.memory_space<vmem>>, %arg3: memref<1x3x8x16xf32, #tpu.memory_space<vmem>>, %arg4: memref<8x3xf32, #tpu.memory_space<vmem>>, %arg5: memref<8x1xf32, #tpu.memory_space<vmem>>, %arg6: memref<8x1xf32, #tpu.memory_space<vmem>>, %arg7: memref<1x8x16x18xf32, #tpu.memory_space<vmem>>) attributes {dimension_semantics = [#tpu.dimension_semantics<parallel>, #tpu.dimension_semantics<parallel>], iteration_bounds = array<i64: 2, 2>, scalar_prefetch = 0 : i64, scratch_operands = 0 : i64, tpu.core_type = #tpu.core_type<tc>, window_params = [{transform_indices = @transform_0, window_bounds = array<i64: 1, 3, 16, 16>}, {transform_indices = @transform_1, window_bounds = array<i64: 1, 3, 8, 16>}, {pipeline_mode = #tpu.pipeline_mode<synchronous>, transform_indices = @transform_2, window_bounds = array<i64: 8, 3>}, {pipeline_mode = #tpu.pipeline_mode<synchronous>, transform_indices = @transform_3, window_bounds = array<i64: 8, 1>}, {pipeline_mode = #tpu.pipeline_mode<synchronous>, transform_indices = @transform_4, window_bounds = array<i64: 8, 1>}, {transform_indices = @transform_5, window_bounds = array<i64: 1, 8, 16, 18>}]} {
    %c0 = arith.constant 0 : index
    %c0_0 = arith.constant 0 : index
    %0 = vector.load %arg4[%c0, %c0_0] : memref<8x3xf32, #tpu.memory_space<vmem>>, vector<8x3xf32>
    %c0_1 = arith.constant 0 : index
    %c0_2 = arith.constant 0 : index
    %1 = vector.load %arg5[%c0_1, %c0_2] : memref<8x1xf32, #tpu.memory_space<vmem>>, vector<8x1xf32>
    %c0_3 = arith.constant 0 : index
    %c0_4 = arith.constant 0 : index
    %2 = vector.load %arg6[%c0_3, %c0_4] : memref<8x1xf32, #tpu.memory_space<vmem>>, vector<8x1xf32>
    %c0_5 = arith.constant 0 : index
    %c0_6 = arith.constant 0 : index
    %c0_7 = arith.constant 0 : index
    %c0_8 = arith.constant 0 : index
    %3 = vector.load %arg2[%c0_5, %c0_6, %c0_7, %c0_8] : memref<1x3x16x16xf32, #tpu.memory_space<vmem>>, vector<1x3x16x16xf32>
    %4 = vector.shape_cast %3 : vector<1x3x16x16xf32> to vector<3x16x16xf32>
    %c0_9 = arith.constant 0 : index
    %c0_10 = arith.constant 0 : index
    %c0_11 = arith.constant 0 : index
    %c0_12 = arith.constant 0 : index
    %5 = vector.load %arg3[%c0_9, %c0_10, %c0_11, %c0_12] : memref<1x3x8x16xf32, #tpu.memory_space<vmem>>, vector<1x3x8x16xf32>
    %6 = vector.shape_cast %5 : vector<1x3x8x16xf32> to vector<3x8x16xf32>
    %7 = vector.extract_strided_slice %6 {offsets = [0, 7, 0], sizes = [3, 1, 16], strides = [1, 1, 1]} : vector<3x8x16xf32> to vector<3x1x16xf32>
    %8 = vector.extract_strided_slice %4 {offsets = [0, 0, 0], sizes = [3, 15, 16], strides = [1, 1, 1]} : vector<3x16x16xf32> to vector<3x15x16xf32>
    %9 = tpu.concatenate %7, %8 in 1 : vector<3x1x16xf32>, vector<3x15x16xf32> -> vector<3x16x16xf32>
    %10 = vector.extract_strided_slice %0 {offsets = [0, 0], sizes = [8, 1], strides = [1, 1]} : vector<8x3xf32> to vector<8x1xf32>
    %11 = vector.shape_cast %10 : vector<8x1xf32> to vector<8x1x1xf32>
    %12 = vector.extract_strided_slice %9 {offsets = [0, 0, 0], sizes = [1, 16, 16], strides = [1, 1, 1]} : vector<3x16x16xf32> to vector<1x16x16xf32>
    %13 = vector.broadcast %11 : vector<8x1x1xf32> to vector<8x16x16xf32>
    %14 = vector.broadcast %12 : vector<1x16x16xf32> to vector<8x16x16xf32>
    %15 = arith.mulf %13, %14 : vector<8x16x16xf32>
    %16 = vector.extract_strided_slice %0 {offsets = [0, 1], sizes = [8, 1], strides = [1, 1]} : vector<8x3xf32> to vector<8x1xf32>
    %17 = vector.shape_cast %16 : vector<8x1xf32> to vector<8x1x1xf32>
    %18 = vector.extract_strided_slice %9 {offsets = [1, 0, 0], sizes = [1, 16, 16], strides = [1, 1, 1]} : vector<3x16x16xf32> to vector<1x16x16xf32>
    %19 = vector.broadcast %17 : vector<8x1x1xf32> to vector<8x16x16xf32>
    %20 = vector.broadcast %18 : vector<1x16x16xf32> to vector<8x16x16xf32>
    %21 = arith.mulf %19, %20 : vector<8x16x16xf32>
    %22 = arith.addf %15, %21 : vector<8x16x16xf32>
    %23 = vector.extract_strided_slice %0 {offsets = [0, 2], sizes = [8, 1], strides = [1, 1]} : vector<8x3xf32> to vector<8x1xf32>
    %24 = vector.shape_cast %23 : vector<8x1xf32> to vector<8x1x1xf32>
    %25 = vector.extract_strided_slice %9 {offsets = [2, 0, 0], sizes = [1, 16, 16], strides = [1, 1, 1]} : vector<3x16x16xf32> to vector<1x16x16xf32>
    %26 = vector.broadcast %24 : vector<8x1x1xf32> to vector<8x16x16xf32>
    %27 = vector.broadcast %25 : vector<1x16x16xf32> to vector<8x16x16xf32>
    %28 = arith.mulf %26, %27 : vector<8x16x16xf32>
    %29 = arith.addf %22, %28 : vector<8x16x16xf32>
    %30 = vector.shape_cast %1 : vector<8x1xf32> to vector<8x1x1xf32>
    %31 = vector.broadcast %30 : vector<8x1x1xf32> to vector<8x16x16xf32>
    %32 = arith.addf %29, %31 : vector<8x16x16xf32>
    %cst = arith.constant 0.000000e+00 : f32
    %33 = vector.broadcast %cst : f32 to vector<8x16x16xf32>
    %34 = arith.maximumf %32, %33 : vector<8x16x16xf32>
    %c16_i32 = arith.constant 16 : i32
    %35 = arith.muli %arg1, %c16_i32 : i32
    %36 = tpu.iota {dimensions = array<i32: 1>} : vector<1x16x1xi32>
    %37 = vector.broadcast %35 : i32 to vector<1x16x1xi32>
    %38 = arith.addi %37, %36 : vector<1x16x1xi32>
    %c1_i32 = arith.constant 1 : i32
    %39 = vector.broadcast %c1_i32 : i32 to vector<1x16x1xi32>
    %40 = arith.cmpi sge, %38, %39 : vector<1x16x1xi32>
    %c16_i32_13 = arith.constant 16 : i32
    %41 = vector.broadcast %c16_i32_13 : i32 to vector<1x16x1xi32>
    %42 = arith.cmpi sle, %38, %41 : vector<1x16x1xi32>
    %43 = arith.andi %40, %42 : vector<1x16x1xi1>
    %44 = vector.shape_cast %2 : vector<8x1xf32> to vector<8x1x1xf32>
    %45 = vector.shape_cast %43 : vector<1x16x1xi1> to vector<1x16x1xi1>
    %46 = vector.broadcast %45 : vector<1x16x1xi1> to vector<8x16x16xi1>
    %47 = vector.shape_cast %44 : vector<8x1x1xf32> to vector<8x1x1xf32>
    %48 = vector.broadcast %47 : vector<8x1x1xf32> to vector<8x16x16xf32>
    %49 = arith.select %46, %34, %48 : vector<8x16x16xi1>, vector<8x16x16xf32>
    %50 = vector.shape_cast %2 : vector<8x1xf32> to vector<8x1x1xf32>
    %51 = vector.shape_cast %50 : vector<8x1x1xf32> to vector<8x1x1xf32>
    %52 = vector.broadcast %51 : vector<8x1x1xf32> to vector<8x16x1xf32>
    %53 = tpu.concatenate %52, %49, %52 in 2 : vector<8x16x1xf32>, vector<8x16x16xf32>, vector<8x16x1xf32> -> vector<8x16x18xf32>
    %c0_14 = arith.constant 0 : index
    %c0_15 = arith.constant 0 : index
    %c0_16 = arith.constant 0 : index
    %c0_17 = arith.constant 0 : index
    %54 = vector.load %arg7[%c0_14, %c0_15, %c0_16, %c0_17] : memref<1x8x16x18xf32, #tpu.memory_space<vmem>>, vector<1x8x16x18xf32>
    %55 = vector.shape_cast %54 : vector<1x8x16x18xf32> to vector<8x16x18xf32>
    %56 = vector.shape_cast %53 : vector<8x16x18xf32> to vector<1x8x16x18xf32>
    tpu.vector_store %arg7[%c0_14, %c0_15, %c0_16, %c0_17], %56 {strides = array<i32>} : memref<1x8x16x18xf32, #tpu.memory_space<vmem>>, vector<1x8x16x18xf32>,
    return
  }
  func.func @transform_0(%arg0: i32, %arg1: i32) -> (i32, i32, i32, i32) {
    %c0_i32 = arith.constant 0 : i32
    %0 = arith.minsi %arg1, %c0_i32 : i32
    %c0_i32_0 = arith.constant 0 : i32
    %c0_i32_1 = arith.constant 0 : i32
    %c0_i32_2 = arith.constant 0 : i32
    return %arg0, %c0_i32_0, %0, %c0_i32_1 : i32, i32, i32, i32
  }
  func.func @transform_1(%arg0: i32, %arg1: i32) -> (i32, i32, i32, i32) {
    %c2_i32 = arith.constant 2 : i32
    %0 = arith.muli %arg1, %c2_i32 : i32
    %c1_i32 = arith.constant 1 : i32
    %1 = arith.subi %0, %c1_i32 : i32
    %c0_i32 = arith.constant 0 : i32
    %c1_i32_0 = arith.constant 1 : i32
    %2 = arith.maxsi %c0_i32, %1 : i32
    %3 = arith.minsi %c1_i32_0, %2 : i32
    %c0_i32_1 = arith.constant 0 : i32
    %c0_i32_2 = arith.constant 0 : i32
    %c0_i32_3 = arith.constant 0 : i32
    return %arg0, %c0_i32_1, %3, %c0_i32_2 : i32, i32, i32, i32
  }
  func.func @transform_2(%arg0: i32, %arg1: i32) -> (i32, i32) {
    %c0_i32 = arith.constant 0 : i32
    %c0_i32_0 = arith.constant 0 : i32
    %c0_i32_1 = arith.constant 0 : i32
    return %c0_i32, %c0_i32_0 : i32, i32
  }
  func.func @transform_3(%arg0: i32, %arg1: i32) -> (i32, i32) {
    %c0_i32 = arith.constant 0 : i32
    %c0_i32_0 = arith.constant 0 : i32
    %c0_i32_1 = arith.constant 0 : i32
    return %c0_i32, %c0_i32_0 : i32, i32
  }
  func.func @transform_4(%arg0: i32, %arg1: i32) -> (i32, i32) {
    %c0_i32 = arith.constant 0 : i32
    %c0_i32_0 = arith.constant 0 : i32
    %c0_i32_1 = arith.constant 0 : i32
    return %c0_i32, %c0_i32_0 : i32, i32
  }
  func.func @transform_5(%arg0: i32, %arg1: i32) -> (i32, i32, i32, i32) {
    %c0_i32 = arith.constant 0 : i32
    %c0_i32_0 = arith.constant 0 : i32
    %c0_i32_1 = arith.constant 0 : i32
    return %arg0, %c0_i32, %arg1, %c0_i32_0 : i32, i32, i32, i32
  }
}

</mosaic_0001>

<bundles_post_ra>
// kernel: model_forward.1
= control target key start
LH: loop header
LB: loop body
LE: loop exit
PB: predicated region body
PF: predicated region fallthrough
CT: control target
= control target key end

     0   :  { %s1836_s18 = smov 0   ;;  %s1838_s19 = smov 0   ;;  %s2532_s0 = inlined_call_operand.vmem [shape: f32[2,3,16,16], index: 0, kind: input, shape index: {}, may-alias: {0,1}]   ;;  %s2533_s1 = inlined_call_operand.vmem [shape: f32[2,3,16,16], index: 1, kind: input, shape index: {}, may-alias: {0,1}]   ;;  %s2534_s2 = inlined_call_operand.vmem [shape: f32[8,3], index: 2, kind: input, shape index: {}]   ;;  %s2535_s3 = inlined_call_operand.vmem [shape: f32[8,1], index: 3, kind: input, shape index: {}]   ;;  %s2536_s4 = inlined_call_operand.vmem [shape: f32[8,1], index: 4, kind: input, shape index: {}]   ;;  %s2537_s5 = inlined_call_operand.vmem [shape: f32[2,8,18,18], index: 5, kind: output, shape index: {}]  }
   0x1   :  { %s1840_s20 = smov 0   ;;  %s1842_s21 = smov 0  }
   0x2   :  { %s1844_s22 = smov 0   ;;  %s1846_s23 = smov 0  }
   0x3   :  { %s1848_s24 = smov 0   ;;  %s1850_s25 = smov 0  }
   0x4   :  { %s1852_s26 = smov 0  }
   0x5 LB: > { %s1449_s27 = sadd.s32 4294967295, %s1766_s26   ;;  %s24_s28 = sadd.s32 1, %s1758_s24  ;;  %s1766_s26 = sphi %s1852_s26, %s15_s26   ;;  %s1762_s25 = sphi %s1850_s25, %s2556_s25   ;;  %s1758_s24 = sphi %s1848_s24, %s2555_s24   ;;  %s1754_s23 = sphi %s1846_s23, %s2554_s23   ;;  %s1750_s22 = sphi %s1844_s22, %s2553_s22   ;;  %s1746_s21 = sphi %s1842_s21, %s2552_s21   ;;  %s1742_s20 = sphi %s1840_s20, %s2551_s20   ;;  %s1738_s19 = sphi %s1838_s19, %s2550_s19   ;;  %s1734_s18 = sphi %s1836_s18, %s2549_s18  }
   0x6   : > { %p25_p0 = scmp.ge.s32.totalorder %s24_s28, 2  ;;  %s27_s29 = sadd.s32 1, %s1762_s25 }
   0x7   : > { %s1451_s30 = sshll.u32 %s1758_s24, 1  ;;  %s80_s6 = sadd.s32 1, %s1746_s21 }
   0x8   : > { %s2558_s28 = smov (%p25_p0, %s24_s28), 0  ;;  %s2560_s29 = smov (!%p25_p0, %s27_s29), %s1762_s25 }
   0x9   : > { %s1452_s7 = sadd.s32 4294967295, %s1451_s30  ;;  %s1458_s8 = sshll.u32 %s2558_s28, 1 }
   0xa   : > { %p29_p1 = scmp.ge.s32.totalorder %s2560_s29, 2  ;;  %p65_p2 = scmp.gt.s32.totalorder %s1452_s7, 0 }
   0xb   : > { %p1453_p3 = scmp.lt.s32.totalorder %s1452_s7, 1  ;;  %s1459_s9 = sadd.s32 4294967295, %s1458_s8 }
   0xc   : > { %s2562_s29 = smov (%p29_p1, %s2560_s29), 0  ;;  %s2564_s7 = smov (!%p65_p2, %s1452_s7), 0 }
   0xd   : > { %p71_p4 = scmp.gt.s32.totalorder %s1459_s9, 0  ;;  %p1460_p5 = scmp.lt.s32.totalorder %s1459_s9, 1 }
   0xe   : > { %s2566_s7 = smov (!%p1453_p3, %s2564_s7), 1  ;;  %s75_s10 = ssub.s32 %s1762_s25, %s2562_s29 }
   0xf   : > { %s2568_s9 = smov (!%p71_p4, %s1459_s9), 0  ;;  %p87_p6 = scmp.ne.s32.totalorder %s1746_s21, %s1742_s20 }
  0x10   : > { %s2570_s9 = smov (!%p1460_p5, %s2568_s9), 1  ;;  %p88_p7 = scmp.eq.s32.totalorder %s1766_s26, 0 }
  0x11   : > { %s167_s11 = ssub.s32 %s1758_s24, %s2558_s28  ;;  %s76_s12 = ssub.s32 %s2566_s7, %s2570_s9 }
  0x12   : > { %s168_s13 = sor.u32 %s167_s11, %s75_s10  ;;  %s77_s14 = sor.u32 %s76_s12, %s75_s10 }
  0x13   : > { %p89_p8 = por %p88_p7, %p87_p6  ;;  %p78_p9 = scmp.eq.s32.totalorder %s77_s14, 0 }
  0x14   : > { %p169_p10 = scmp.eq.s32.totalorder %s168_s13, 0  ;;  %s171_s15 = sadd.s32 1, %s1738_s19 }
  0x15   : > { %p181_p11 = scmp.ne.s32.totalorder %s1738_s19, %s1734_s18  ;;  %p182_p12 = scmp.eq.s32.totalorder %s1449_s27, 3 }
  0x16   : > { %s1903_s16 = scalar_select %p78_p9, %s1746_s21, %s80_s6  }
  0x17   : > { %s1906_s17 = scalar_select %p169_p10, %s1738_s19, %s171_s15  }
  0x18   : > { %p1910_p13 = por %p182_p12, %p181_p11  ;;  %p1466_p0 = scmp.ge.s32.totalorder %s1766_s26, 4 }
  0x1a   : > { %213 = sbr.rel (%p1466_p0) target bundleno = 40 (0x28), region = 28 }
  0x1f   : > { %233 = sbr.rel (!%p89_p8) target bundleno = 40 (0x28), region = 36  ;;  %s235_s8 = sand.u32 (%p89_p8), 1, %s1746_s21  }
  0x20   : > { %s1506_s9 = smul.u32 (%p89_p8), 6, %s1762_s25 }
  0x21   : > { %s1505_s10 = smul.u32 (%p89_p8), 24, %s235_s8 }
  0x22   : > { %s245_s11 = sadd.s32 (%p89_p8), %s1506_s9, %s2566_s7 }
  0x23   : > { %s1474_s6 = sshll.u32 (%p89_p8), %s245_s11, 3  ;;  %s237_s27 = scalar_lea.vmem (%p89_p8), [#allocation2], %s1505_s10 }
  0x24   : > { %s247_s14 = scalar_lea.vmem %s2533_s1, %s1474_s6 }
  0x25   : > { %v280_v0 = vld [vmem:[%s247_s14] sm:$0xff]  ;;  %v282_v1 = vld [vmem:[%s247_s14 + $0x10] sm:$0xff] }
  0x26   : > { %v284_v2 = vld [vmem:[%s247_s14 + $0x20] sm:$0xff]  ;;  %281 = vst [vmem:[%s237_s27] sm:$0xff] %v280_v0  ;;  %283 = vst [vmem:[%s237_s27 + $0x8] sm:$0xff] %v282_v1 }
  0x27   : > { %285 = vst [vmem:[%s237_s27 + $0x10] sm:$0xff] %v284_v2 }
  0x28 PF: > { %p1475_p1 = scmp.ge.s32.totalorder %s1766_s26, 1  ;;  %p290_p2 = scmp.lt.s32.totalorder %s1766_s26, 5 }
  0x2a   : > { %p291_p3 = pnand %p1475_p1, %p290_p2 }
  0x2b   : > { %s1804_s6 = smov (!%p291_p3), 17   ;;  %p334_p4 = scmp.lt.s32.totalorder (!%p291_p3), %s1750_s22, 0 }
  0x2c   : > { %294 = sbr.rel (%p291_p3) target bundleno = 457 (0x1c9), region = 74  ;;  %p337_p5 = scmp.lt.s32.totalorder (!%p291_p3), %s1754_s23, 1 }
  0x2d   : > { %s297_s7 = sand.u32 (!%p291_p3), 1, %s1742_s20   ;;  %s1479_s20 = sshll.u32 (!%p291_p3), %s1750_s22, 4 }
  0x2e   : > { %s1507_s8 = smul.u32 (!%p291_p3), 24, %s297_s7 }
  0x31   : > { %v359_v3 = vld [vmem:[%s2534_s2] sm:$0xff]  ;;  %v410_v4 = vlaneseq  ;;  %v1800_v5 = vmov 1   ;;  %v1801_v6 = vmov 1966171168   ;;  %v1802_v8 = vmov 0   ;;  %s335_s12 = scalar_select %p334_p4, %s1750_s22, 0 }
  0x32   : > { %1652 = vset.pattern.permute.xlu0 %v1800_v5  ;;  %v408_v7 = vunpack.c.l.s4 %v1801_v6  ;;  %1653 = vset.pattern.permute.xlu1 %v1802_v8  ;;  %v406_v11 = vcombine.high %v359_v3, %v359_v3  ;;  %v361_v13 = vld [vmem:[%s2536_s4] sm:$0xff]  ;;  %v1803_v59 = vmov 2   ;;  %s338_s14 = scalar_select %p337_p5, %s1754_s23, 1  ;;  %vm386_vm0 = vcmask 1040384  }
  0x33   : > { %v1927_v9 = vshrl.u32 %v410_v4, 7  ;;  %v360_v21 = vld [vmem:[%s2535_s3] sm:$0xff]  ;;  %v823_v24 = vcombine.high %v361_v13, %v361_v13  ;;  %s1477_s13 = sshll.u32 %s335_s12, 1  ;;  %vm1052_vm7 = vcmask 7168   ;;  %vm1069_vm8 = vcmask 138240  }
  0x34   : > { %v409_v10 = vunpack.c.0.s8 %v408_v7  ;;  %v664_v22 = vcombine.high %v360_v21, %v360_v21  ;;  %p339_p6 = scmp.lt.s32.totalorder %s1477_s13, 1  ;;  %s1508_s27 = smul.u32 6, %s338_s14  ;;  %vm1086_vm9 = vcmask 146432  }
  0x35   : > { %v1937_v15 = vsub.s32 0, %v1927_v9  ;;  %s299_s14 = scalar_lea.vmem [#allocation2], %s1507_s8 }
  0x36   : > { %v1930_v12 = vsub.s32 %v409_v10, %v1927_v9  ;;  %s2572_s13 = smov (!%p339_p6, %s1477_s13), 1 }
  0x37   : > { %s342_s15 = sadd.s32 %s1508_s27, %s2572_s13  ;;  %s1805_s13 = smov 1  }
  0x38   : > { %v413_v14 = vrot.slane %v359_v3, %v1930_v12  ;;  %v420_v16 = vrot.slane %v406_v11, %v1930_v12  ;;  %v830_v17 = vrot.slane %v361_v13, %v1930_v12  ;;  %v837_v32 = vrot.slane %v823_v24, %v1930_v12  ;;  %s1478_s9 = sshll.u32 %s342_s15, 3  ;;  %s331_s27 = sand.u32 1, %s1734_s18  }
  0x39   : > { %v1957_v33 = vrot.slane %v664_v22, %v1930_v12  ;;  %v671_v63 = vrot.slane %v360_v21, %v1930_v12  ;;  %s344_s12 = scalar_lea.vmem %s2532_s0, %s1478_s9  ;;  %s1476_s7 = sshll.u32 %s331_s27, 7 }
  0x3a   : > { %v429_v18 = vrot.slane %v413_v14, %v1930_v12  ;;  %v422_v19 = vcombine.high %v420_v16, %v420_v16  ;;  %v421_v20 = vcombine.high %v413_v14, %v413_v14  ;;  %v838_v23 = vcombine.high %v830_v17, %v830_v17  ;;  %s1481_s18 = sshll.u32 (%p1910_p13), %s1750_s22, 1  ;;  %s1509_s15 = smul.u32 (%p1910_p13), 24, %s1754_s23 }
  0x3b   : > { %v1968_v38 = vrot.slane %v1957_v33, %v1930_v12  ;;  %v839_v39 = vcombine.high %v837_v32, %v837_v32  ;;  %v846_v40 = vrot.slane %v830_v17, %v1930_v12  ;;  %v853_v41 = vrot.slane %v837_v32, %v1930_v12  ;;  %s1111_s8 = ssub.s32 (%p1910_p13), 3, %s1481_s18 }
  0x3c   : > { %v1946_v25 = vrot.slane %v429_v18, %v1937_v15  ;;  %v451_v26 = vcombine.high %v429_v18, %v429_v18  ;;  %v450_v27 = vrot.slane %v422_v19, %v1930_v12  ;;  %v443_v28 = vrot.slane %v421_v20, %v1930_v12  ;;  %p1112_p7 = scmp.lt.s32.totalorder (%p1910_p13), %s1111_s8, 2  ;;  %s1117_s9 = sadd.s32 (%p1910_p13), %s1509_s15, %s1481_s18 }
  0x3d   : > { %v1960_v34 = vrot.slane %v838_v23, %v1930_v12  ;;  %v732_v44 = vrot.slane %v1968_v38, %v1937_v15  ;;  %v710_v45 = vcombine.high %v1968_v38, %v1968_v38  ;;  %v867_v46 = vrot.slane %v839_v39, %v1930_v12  ;;  %v362_v39 = vld [vmem:[%s344_s12] sm:$0xff]  ;;  %s1484_s10 = sshll.u32 (%p1910_p13), %s1117_s9, 3 }
  0x3e   : > { %536 = vperm.xlu0 %1652, %v1946_v25   ;;  %v466_v29 = vrot.slane %v451_v26, %v1937_v15  ;;  %v1953_v30 = vrot.slane %v450_v27, %v1937_v15  ;;  %v453_v31 = vcombine.high %v443_v28, %v443_v28  ;;  %v454_v36 = vcombine.high %v450_v27, %v450_v27 }
  0x3f   : > { %v870_v37 = vcombine.high %v1960_v34, %v1960_v34  ;;  %v462_v42 = vrot.slane %v443_v28, %v1937_v15  ;;  %v1983_v47 = vrot.slane %v846_v40, %v1937_v15  ;;  %v868_v48 = vcombine.high %v846_v40, %v846_v40  ;;  %v363_v40 = vld [vmem:[%s344_s12 + $0x8] sm:$0xff] }
  0x40   : > { %496 = vperm.xlu1 %1653, %v466_v29   ;;  %v470_v35 = vrot.slane %v453_v31, %v1937_v15  ;;  %v1986_v49 = vrot.slane %v853_v41, %v1937_v15  ;;  %v486_v50 = vrot.slane %v454_v36, %v1937_v15  ;;  %v1990_v51 = vrot.slane %v710_v45, %v1937_v15  ;;  %v365_v45 = vld [vmem:[%s344_s12 + $0x18] sm:$0xff] }
  0x41   : > { %v1975_v43 = vrot.slane %v870_v37, %v1937_v15  ;;  %v869_v52 = vcombine.high %v853_v41, %v853_v41  ;;  %v1993_v53 = vrot.slane %v867_v46, %v1937_v15  ;;  %v871_v54 = vcombine.high %v867_v46, %v867_v46  ;;  %v368_v41 = vld [vmem:[%s299_s14] sm:$0xff]  ;;  %v369_v46 = vld [vmem:[%s299_s14 + $0x8] sm:$0xff] }
  0x42   : > { %556 = vperm.xlu0 %1652, %v1953_v30   ;;  %v1996_v55 = vrot.slane %v868_v48, %v1937_v15  ;;  %v436_v58 = vrot.slane %v420_v16, %v1930_v12  ;;  %v679_v0 = vcombine.high %v671_v63, %v671_v63  ;;  %v687_v1 = vrot.slane %v671_v63, %v1930_v12  ;;  %v366_v48 = vld [vmem:[%s344_s12 + $0x20] sm:$0xff] }
  0x43   : > { %v2000_v56 = vrot.slane %v869_v52, %v1937_v15  ;;  %v2003_v57 = vrot.slane %v871_v54, %v1937_v15  ;;  %v2028_v17 = vrot.slane %v1960_v34, %v1937_v15  ;;  %v374_v52 = vrot.slane %v368_v41, 7 }
  0x44   : > { %508 = vperm.xlu1 %1653, %v1953_v30   ;;  %v474_v60 = vrot.slane %v436_v58, %v1937_v15  ;;  %v452_v61 = vcombine.high %v436_v58, %v436_v58  ;;  %v701_v2 = vrot.slane %v679_v0, %v1930_v12  ;;  %v716_v3 = vrot.slane %v687_v1, %v1937_v15 }
  0x45   : > { %v709_v16 = vcombine.high %v687_v1, %v687_v1  ;;  %v387_v54 = vrot.slane %v362_v39, 7  ;;  %v388_v58 = vrot.slane %v363_v40, 7  ;;  %v393_v0 = vrot.slane %v366_v48, 7 }
  0x46   : > { %548 = vperm.xlu0 %1652, %v470_v35   ;;  %v482_v62 = vrot.slane %v452_v61, %v1937_v15  ;;  %v711_v4 = vcombine.high %v701_v2, %v701_v2  ;;  %v720_v14 = vrot.slane %v701_v2, %v1937_v15 }
  0x48   : > { %1654 = vset.pattern.permute.xlu1 %v1800_v5  ;;  %v728_v6 = vrot.slane %v711_v4, %v1937_v15  ;;  %v2112_v4 = vsel %vm386_vm0, %v374_v52, %v387_v54 }
  0x49   : > { %540 = vperm.xlu1 %1654, %v462_v42  }
  0x4a   : > { %564 = vperm.xlu0 %1652, %v486_v50  }
  0x4d   : > { %1655 = vset.pattern.permute.xlu1 %v1802_v8 }
  0x4e   : > { %500 = vperm.xlu1 %1655, %v470_v35   ;;  %1658 = vset.pattern.permute.xlu0 %v1803_v59 }
  0x4f   : > { %604 = vperm.xlu0 %1658, %v462_v42  }
  0x52   : > { %516 = vperm.xlu1 %1655, %v486_v50  }
  0x53   : > { %616 = vperm.xlu0 %1658, %v474_v60  }
  0x56   : > { %1656 = vset.pattern.permute.xlu1 %v1800_v5  ;;  %v680_v5 = vcombine.high %v1957_v33, %v1957_v33 }
  0x57   : > { %624 = vperm.xlu0 %1658, %v482_v62   ;;  %544 = vperm.xlu1 %1656, %v466_v29  }
  0x58   : > { %v708_v7 = vrot.slane %v680_v5, %v1930_v12  ;;  %v724_v12 = vrot.slane %v709_v16, %v1937_v15  ;;  %v812_v5 = vadd.s32 8, %v1927_v9 }
  0x5a   : > { %v736_v10 = vrot.slane %v708_v7, %v1937_v15  ;;  %v712_v11 = vcombine.high %v708_v7, %v708_v7 }
  0x5b   : > { %1659 = vset.pattern.permute.xlu0 %v1802_v8  ;;  %552 = vperm.xlu1 %1656, %v474_v60  }
  0x5c   : > { %488 = vperm.xlu0 %1659, %v1946_v25   ;;  %v744_v13 = vrot.slane %v712_v11, %v1937_v15 }
  0x5f   : > { %560 = vperm.xlu1 %1656, %v482_v62  }
  0x60   : > { %492 = vperm.xlu0 %1659, %v462_v42  }
  0x63   : > { %1657 = vset.pattern.permute.xlu1 %v1803_v59 }
  0x64   : > { %504 = vperm.xlu0 %1659, %v474_v60   ;;  %600 = vperm.xlu1 %1657, %v1946_v25   ;;  %v375_v60 = vrot.slane %v369_v46, 7 }
  0x68   : > { %512 = vperm.xlu0 %1659, %v482_v62   ;;  %608 = vperm.xlu1 %1657, %v466_v29   ;;  %v391_v62 = vrot.slane %v365_v45, 7 }
  0x6c   : > { %746 = vperm.xlu0 %1659, %v716_v3   ;;  %612 = vperm.xlu1 %1657, %v470_v35   ;;  %v2109_v3 = vsel %vm386_vm0, %v387_v54, %v388_v58 }
  0x70   : > { %758 = vperm.xlu0 %1659, %v728_v6   ;;  %620 = vperm.xlu1 %1657, %v1953_v30  }
  0x74   : > { %766 = vperm.xlu0 %1659, %v736_v10   ;;  %628 = vperm.xlu1 %1657, %v486_v50   ;;  %v367_v50 = vld [vmem:[%s344_s12 + $0x28] sm:$0xff]  ;;  %v813_v10 = vstv %s1479_s20 }
  0x75   : > { %v394_v1 = vrot.slane %v367_v50, 7  ;;  %v815_v45 = vadd.s32 %v813_v10, %v812_v5 }
  0x77   : > { %vm817_vm1 = vcmp.ge.s32.totalorder %v815_v45, 1  ;;  %vm819_vm2 = vcmp.le.s32.totalorder %v815_v45, 16 }
  0x78   : > { %774 = vperm.xlu0 %1659, %v744_v13   ;;  %1660 = vset.pattern.permute.xlu1 %v1802_v8  ;;  %vm2168_vm5 = vmand %vm817_vm1, %vm819_vm2 }
  0x79   : > { %750 = vperm.xlu1 %1660, %v720_v14   ;;  %v2124_v14 = vsel %vm386_vm0, %v393_v0, %v394_v1 }
  0x7c   : > { %913 = vperm.xlu0 %1659, %v2028_v17  }
  0x7d   : > { %754 = vperm.xlu1 %1660, %v724_v12  }
  0x80   : > { %921 = vperm.xlu0 %1659, %v1975_v43  }
  0x81   : > { %762 = vperm.xlu1 %1660, %v732_v44   ;;  %v364_v44 = vld [vmem:[%s344_s12 + $0x10] sm:$0xff] }
  0x82   : > { %v390_v61 = vrot.slane %v364_v44, 7 }
  0x84   : > { %929 = vperm.xlu0 %1659, %v1993_v53   ;;  %v2118_v11 = vsel %vm386_vm0, %v390_v61, %v391_v62  ;;  %v2121_v13 = vsel %vm386_vm0, %v375_v60, %v390_v61 }
  0x85   : > { %770 = vperm.xlu1 %1660, %v1990_v51   ;;  %v370_v51 = vld [vmem:[%s299_s14 + $0x10] sm:$0xff]  ;;  %s2396_s14 = scalar_lea.vmem (%p1910_p13), %s2537_s5, %s1484_s10  }
  0x86   : > { %v376_v63 = vrot.slane %v370_v51, 7  ;;  %v814_v51 = vadd.s32 %v813_v10, %v1927_v9 }
  0x88   : > { %937 = vperm.xlu0 %1659, %v2003_v57   ;;  %v2127_v16 = vsel %vm386_vm0, %v376_v63, %v393_v0  ;;  %vm816_vm3 = vcmp.ge.s32.totalorder %v814_v51, 1  ;;  %vm818_vm4 = vcmp.le.s32.totalorder %v814_v51, 16 }
  0x89   : > { %909 = vperm.xlu1 %1660, %v1983_v47   ;;  %vm2184_vm6 = vmand %vm816_vm3, %vm818_vm4 }
  0x8c   : > { %1030 = vrot.lane.b32.xlu0 %v2028_v17, %s1804_s6 }
  0x8d   : > { %917 = vperm.xlu1 %1660, %v1996_v55  }
  0x90   : > { %1034 = vrot.lane.b32.xlu0 %v1975_v43, %s1804_s6 }
  0x91   : > { %925 = vperm.xlu1 %1660, %v1986_v49  }
  0x94   : > { %1038 = vrot.lane.b32.xlu0 %v1993_v53, %s1804_s6 }
  0x95   : > { %933 = vperm.xlu1 %1660, %v2000_v56  }
  0x99   : > { %1028 = vrot.lane.b32.xlu1 %v1983_v47, %s1804_s6 }
  0x9d   : > { %1032 = vrot.lane.b32.xlu1 %v1996_v55, %s1804_s6 }
  0xa1   : > { %1036 = vrot.lane.b32.xlu1 %v1986_v49, %s1804_s6 }
  0xb9   : > { %v2055_v8 = vpop.permute.xlu0 %536 }
  0xba   : > { %v568_v40 = vmul.f32 %v2055_v8, %v2118_v11 }
  0xbb   : > { %v2057_v15 = vpop.permute.xlu1 %496 }
  0xbd   : > { %v2059_v18 = vpop.permute.xlu0 %556 }
  0xbf   : > { %v2061_v19 = vpop.permute.xlu1 %508 }
  0xc1   : > { %v2063_v20 = vpop.permute.xlu0 %548 }
  0xc4   : > { %v2065_v21 = vpop.permute.xlu1 %540 }
  0xc5   : > { %v2067_v22 = vpop.permute.xlu0 %564  ;;  %v569_v0 = vmul.f32 %v2065_v21, %v2121_v13  ;;  %v570_v1 = vmul.f32 %v2065_v21, %v2118_v11 }
  0xc9   : > { %v2069_v23 = vpop.permute.xlu1 %500 }
  0xca   : > { %v2071_v24 = vpop.permute.xlu0 %604 }
  0xcb   : > { %v634_v10 = vmul.f32 %v2071_v24, %v2124_v14 }
  0xcd   : > { %v2073_v25 = vpop.permute.xlu1 %516 }
  0xce   : > { %v2075_v26 = vpop.permute.xlu0 %616 }
  0xd2   : > { %v2077_v27 = vpop.permute.xlu1 %544  ;;  %v2080_v28 = vpop.permute.xlu0 %624 }
  0xd3   : > { %v572_v51 = vmul.f32 %v2077_v27, %v2118_v11 }
  0xd6   : > { %v2082_v29 = vpop.permute.xlu1 %552 }
  0xd7   : > { %v489_v30 = vpop.permute.xlu0 %488  ;;  %v575_v61 = vmul.f32 %v2082_v29, %v2121_v13 }
  0xd8   : > { %v519_v6 = vmul.f32 %v489_v30, %v2112_v4  ;;  %v520_v7 = vmul.f32 %v489_v30, %v2109_v3  ;;  %v567_v30 = vmul.f32 %v2055_v8, %v2121_v13  ;;  %v576_v8 = vmul.f32 %v2082_v29, %v2118_v11 }
  0xd9   : > { %v639_v29 = vmul.f32 %v2075_v26, %v2127_v16 }
  0xda   : > { %v2086_v31 = vpop.permute.xlu1 %560  ;;  %v583_v46 = vadd.f32 %v567_v30, %v519_v6  ;;  %v584_v48 = vadd.f32 %v568_v40, %v520_v7  ;;  %v640_v6 = vmul.f32 %v2075_v26, %v2124_v14  ;;  %v577_v26 = vmul.f32 %v2059_v18, %v2121_v13 }
  0xdb   : > { %v2089_v33 = vpop.permute.xlu0 %492 }
  0xdc   : > { %v522_v9 = vmul.f32 %v2089_v33, %v2109_v3 }
  0xde   : > { %v586_v21 = vadd.f32 %v570_v1, %v522_v9 }
  0xdf   : > { %v601_v32 = vpop.permute.xlu1 %600  ;;  %v505_v35 = vpop.permute.xlu0 %504 }
  0xe0   : > { %v631_v41 = vmul.f32 %v601_v32, %v2127_v16  ;;  %v632_v44 = vmul.f32 %v601_v32, %v2124_v14  ;;  %v527_v52 = vmul.f32 %v505_v35, %v2112_v4  ;;  %v528_v54 = vmul.f32 %v505_v35, %v2109_v3 }
  0xe1   : > { %v521_v32 = vmul.f32 %v2089_v33, %v2112_v4  ;;  %v650_v9 = vadd.f32 %v634_v10, %v586_v21 }
  0xe2   : > { %v647_v58 = vadd.f32 %v631_v41, %v583_v46  ;;  %v648_v60 = vadd.f32 %v632_v44, %v584_v48  ;;  %v591_v7 = vadd.f32 %v575_v61, %v527_v52  ;;  %v592_v33 = vadd.f32 %v576_v8, %v528_v54 }
  0xe3   : > { %v2091_v34 = vpop.permute.xlu1 %608  ;;  %v2101_v38 = vpop.permute.xlu0 %512  ;;  %v585_v30 = vadd.f32 %v569_v0, %v521_v32  ;;  %v578_v46 = vmul.f32 %v2059_v18, %v2118_v11  ;;  %v529_v48 = vmul.f32 %v2061_v19, %v2112_v4  ;;  %v571_v8 = vmul.f32 %v2077_v27, %v2121_v13 }
  0xe4   : > { %v524_v0 = vmul.f32 %v2057_v15, %v2109_v3 }
  0xe5   : > { %v593_v1 = vadd.f32 %v577_v26, %v529_v48 }
  0xe6   : > { %v588_v21 = vadd.f32 %v572_v51, %v524_v0 }
  0xe7   : > { %v2094_v36 = vpop.permute.xlu1 %612  ;;  %v747_v59 = vpop.permute.xlu0 %746 }
  0xe8   : > { %v777_v63 = vadd.f32 %v747_v59, %v647_v58  ;;  %v778_v35 = vadd.f32 %v747_v59, %v648_v60  ;;  %v633_v59 = vmul.f32 %v2071_v24, %v2127_v16  ;;  %v530_v24 = vmul.f32 %v2061_v19, %v2109_v3 }
  0xe9   : > { %v655_v58 = vadd.f32 %v639_v29, %v591_v7  ;;  %v656_v60 = vadd.f32 %v640_v6, %v592_v33  ;;  %v523_v19 = vmul.f32 %v2057_v15, %v2112_v4  ;;  %v635_v29 = vmul.f32 %v2091_v34, %v2127_v16 }
  0xea   : > { %v793_v40 = vmax.f32 %v777_v63, 0.0  ;;  %v794_v41 = vmax.f32 %v778_v35, 0.0  ;;  %v649_v32 = vadd.f32 %v633_v59, %v585_v30  ;;  %v636_v6 = vmul.f32 %v2091_v34, %v2124_v14 }
  0xeb   : > { %v2096_v37 = vpop.permute.xlu1 %620  ;;  %v2129_v12 = vpop.permute.xlu0 %758  ;;  %v594_v7 = vadd.f32 %v578_v46, %v530_v24  ;;  %v573_v33 = vmul.f32 %v2063_v20, %v2121_v13  ;;  %v525_v15 = vmul.f32 %v2069_v23, %v2112_v4  ;;  %v587_v30 = vadd.f32 %v571_v8, %v523_v19 }
  0xec   : > { %v641_v34 = vmul.f32 %v2096_v37, %v2127_v16  ;;  %v652_v24 = vadd.f32 %v636_v6, %v588_v21  ;;  %v579_v19 = vmul.f32 %v2086_v31, %v2121_v13  ;;  %v637_v6 = vmul.f32 %v2094_v36, %v2127_v16 }
  0xed   : > { %v651_v48 = vadd.f32 %v635_v29, %v587_v30  ;;  %v533_v30 = vmul.f32 %v2073_v25, %v2112_v4 }
  0xee   : > { %v657_v8 = vadd.f32 %v641_v34, %v593_v1 }
  0xef   : > { %v2103_v42 = vpop.permute.xlu1 %628  ;;  %v2146_v62 = vpop.permute.xlu0 %766 }
  0xf3   : > { %v2180_v52 = vpop.permute.xlu0 %774 }
  0xf4   : > { %v2105_v2 = vpop.permute.xlu1 %750 }
  0xf5   : > { %v779_v59 = vadd.f32 %v2105_v2, %v649_v32  ;;  %v780_v10 = vadd.f32 %v2105_v2, %v650_v9  ;;  %v531_v2 = vmul.f32 %v2101_v38, %v2112_v4 }
  0xf7   : > { %v595_v0 = vadd.f32 %v579_v19, %v531_v2 }
  0xf8   : > { %v2131_v39 = vpop.permute.xlu1 %754 }
  0xf9   : > { %v781_v32 = vadd.f32 %v2131_v39, %v651_v48  ;;  %v782_v9 = vadd.f32 %v2131_v39, %v652_v24  ;;  %v643_v39 = vmul.f32 %v2080_v28, %v2127_v16 }
  0xfb   : > { %v659_v21 = vadd.f32 %v643_v39, %v595_v0 }
  0xfc   : > { %v763_v50 = vpop.permute.xlu1 %762 }
  0xfd   : > { %v785_v63 = vadd.f32 %v763_v50, %v655_v58  ;;  %v786_v35 = vadd.f32 %v763_v50, %v656_v60  ;;  %v574_v50 = vmul.f32 %v2063_v20, %v2118_v11  ;;  %v532_v20 = vmul.f32 %v2101_v38, %v2109_v3 }
  0xfe   : > { %v795_v58 = vmax.f32 %v779_v59, 0.0  ;;  %v796_v60 = vmax.f32 %v780_v10, 0.0  ;;  %v580_v38 = vmul.f32 %v2086_v31, %v2118_v11  ;;  %v797_v59 = vmax.f32 %v781_v32, 0.0 }
  0xff   : > { %v801_v26 = vmax.f32 %v785_v63, 0.0  ;;  %v802_v46 = vmax.f32 %v786_v35, 0.0  ;;  %v582_v63 = vmul.f32 %v2067_v22, %v2118_v11  ;;  %v526_v35 = vmul.f32 %v2069_v23, %v2109_v3 }
 0x100   : > { %v2156_v5 = vpop.permute.xlu1 %770  ;;  %v596_v31 = vadd.f32 %v580_v38, %v532_v20  ;;  %v638_v23 = vmul.f32 %v2094_v36, %v2124_v14  ;;  %v787_v11 = vadd.f32 %v2146_v62, %v657_v8  ;;  %v798_v10 = vmax.f32 %v782_v9, 0.0 }
 0x104   : > { %v910_v54 = vpop.permute.xlu1 %909 }
 0x105   : > { %v941_v18 = vsel %vm2168_vm5, %v794_v41, %v910_v54  ;;  %v940_v61 = vsel %vm2184_vm6, %v793_v40, %v910_v54  ;;  %v914_v40 = vpop.permute.xlu0 %913  ;;  %v642_v41 = vmul.f32 %v2096_v37, %v2124_v14  ;;  %v581_v37 = vmul.f32 %v2067_v22, %v2121_v13 }
 0x106   : > { %982 = vrot.lane.b32.xlu0 %v941_v18, %s1805_s13  ;;  %980 = vrot.lane.b32.xlu1 %v940_v61, %s1805_s13  ;;  %v589_v13 = vadd.f32 %v573_v33, %v525_v15  ;;  %v943_v1 = vsel %vm2168_vm5, %v796_v60, %v914_v40  ;;  %v644_v22 = vmul.f32 %v2080_v28, %v2124_v14 }
 0x107   : > { %v658_v51 = vadd.f32 %v642_v41, %v594_v7  ;;  %v942_v7 = vsel %vm2184_vm6, %v795_v58, %v914_v40  ;;  %v590_v15 = vadd.f32 %v574_v50, %v526_v35  ;;  %v534_v28 = vmul.f32 %v2073_v25, %v2109_v3 }
 0x108   : > { %v918_v27 = vpop.permute.xlu1 %917  ;;  %v653_v40 = vadd.f32 %v637_v6, %v589_v13  ;;  %v660_v36 = vadd.f32 %v644_v22, %v596_v31  ;;  %v646_v50 = vmul.f32 %v2103_v42, %v2124_v14  ;;  %v803_v25 = vmax.f32 %v787_v11, 0.0 }
 0x109   : > { %v922_v29 = vpop.permute.xlu0 %921  ;;  %v788_v33 = vadd.f32 %v2146_v62, %v658_v51  ;;  %v945_v34 = vsel %vm2168_vm5, %v798_v10, %v918_v27  ;;  %v944_v41 = vsel %vm2184_vm6, %v797_v59, %v918_v27  ;;  %v645_v62 = vmul.f32 %v2103_v42, %v2127_v16 }
 0x10a   : > { %v790_v2 = vadd.f32 %v2156_v5, %v660_v36  ;;  %v597_v20 = vadd.f32 %v581_v37, %v533_v30  ;;  %v598_v27 = vadd.f32 %v582_v63, %v534_v28  ;;  %v783_v42 = vadd.f32 %v2129_v12, %v653_v40 }
 0x10b   : > { %v804_v3 = vmax.f32 %v788_v33, 0.0 }
 0x10c   : > { %v926_v54 = vpop.permute.xlu1 %925  ;;  %v662_v58 = vadd.f32 %v646_v50, %v598_v27  ;;  %v806_v60 = vmax.f32 %v790_v2, 0.0 }
 0x10d   : > { %v949_v18 = vsel %vm2168_vm5, %v802_v46, %v926_v54  ;;  %v948_v61 = vsel %vm2184_vm6, %v801_v26, %v926_v54  ;;  %v654_v26 = vadd.f32 %v638_v23, %v590_v15  ;;  %v930_v4 = vpop.permute.xlu0 %929  ;;  %v789_v46 = vadd.f32 %v2156_v5, %v659_v21 }
 0x10e   : > { %998 = vrot.lane.b32.xlu0 %v949_v18, %s1805_s13  ;;  %996 = vrot.lane.b32.xlu1 %v948_v61, %s1805_s13  ;;  %v951_v48 = vsel %vm2168_vm5, %v804_v3, %v930_v4  ;;  %v950_v16 = vsel %vm2184_vm6, %v803_v25, %v930_v4  ;;  %v661_v54 = vadd.f32 %v645_v62, %v597_v20 }
 0x10f   : > { %v784_v14 = vadd.f32 %v2129_v12, %v654_v26  ;;  %v805_v5 = vmax.f32 %v789_v46, 0.0  ;;  %v799_v12 = vmax.f32 %v783_v42, 0.0  ;;  %v792_v38 = vadd.f32 %v2180_v52, %v662_v58 }
 0x110   : > { %v934_v24 = vpop.permute.xlu1 %933  ;;  %v791_v19 = vadd.f32 %v2180_v52, %v661_v54 }
 0x111   : > { %v953_v18 = vsel %vm2168_vm5, %v806_v60, %v934_v24  ;;  %v952_v61 = vsel %vm2184_vm6, %v805_v5, %v934_v24  ;;  %v800_v37 = vmax.f32 %v784_v14, 0.0  ;;  %v946_v51 = vsel %vm2184_vm6, %v799_v12, %v922_v29  ;;  %v938_v32 = vpop.permute.xlu0 %937 }
 0x112   : > { %986 = vrot.lane.b32.xlu0 %v943_v1, %s1805_s13  ;;  %984 = vrot.lane.b32.xlu1 %v942_v7, %s1805_s13  ;;  %v807_v9 = vmax.f32 %v791_v19, 0.0  ;;  %v808_v63 = vmax.f32 %v792_v38, 0.0 }
 0x113   : > { %v947_v8 = vsel %vm2168_vm5, %v800_v37, %v922_v29 }
 0x114   : > { %v955_v35 = vsel %vm2168_vm5, %v808_v63, %v938_v32  ;;  %v954_v52 = vsel %vm2184_vm6, %v807_v9, %v938_v32  ;;  %v1029_v0 = vpop.permute.xlu1 %1028 }
 0x115   : > { %v1031_v13 = vpop.permute.xlu0 %1030 }
 0x116   : > { %990 = vrot.lane.b32.xlu0 %v945_v34, %s1805_s13  ;;  %988 = vrot.lane.b32.xlu1 %v944_v41, %s1805_s13 }
 0x118   : > { %v1033_v31 = vpop.permute.xlu1 %1032 }
 0x119   : > { %v1035_v29 = vpop.permute.xlu0 %1034 }
 0x11a   : > { %1002 = vrot.lane.b32.xlu0 %v951_v48, %s1805_s13  ;;  %1000 = vrot.lane.b32.xlu1 %v950_v16, %s1805_s13 }
 0x11c   : > { %v1037_v44 = vpop.permute.xlu1 %1036 }
 0x11d   : > { %v1039_v6 = vpop.permute.xlu0 %1038 }
 0x11e   : > { %1006 = vrot.lane.b32.xlu0 %v953_v18, %s1805_s13  ;;  %1004 = vrot.lane.b32.xlu1 %v952_v61, %s1805_s13 }
 0x122   : > { %994 = vrot.lane.b32.xlu0 %v947_v8, %s1805_s13  ;;  %992 = vrot.lane.b32.xlu1 %v946_v51, %s1805_s13 }
 0x126   : > { %1010 = vrot.lane.b32.xlu0 %v955_v35, %s1805_s13  ;;  %1008 = vrot.lane.b32.xlu1 %v954_v52, %s1805_s13 }
 0x12a   : > { %1042 = vrot.lane.b32.xlu0 %v2003_v57, %s1804_s6  ;;  %1040 = vrot.lane.b32.xlu1 %v2000_v56, %s1804_s6  ;;  %s2311_s6 = scalar_lea.vmem [#allocation3], %s1476_s7  }
 0x178   : > { %v983_v45 = vpop.permute.xlu0 %982  ;;  %v981_v1 = vpop.permute.xlu1 %980 }
 0x179   : > { %v1054_v7 = vsel %vm1052_vm7, %v1983_v47, %v983_v45  ;;  %v1053_v39 = vsel %vm1052_vm7, %v1983_v47, %v981_v1 }
 0x17a   : > { %v1071_v22 = vsel %vm1069_vm8, %v1054_v7, %v1029_v0  ;;  %v1070_v23 = vsel %vm1069_vm8, %v1053_v39, %v1029_v0 }
 0x17b   : > { %1088 = vst.msk [vmem:[%s2311_s6 + $0x8] sm:$0xff] %vm1086_vm9, %v1071_v22  ;;  %1087 = vst.msk [vmem:[%s2311_s6] sm:$0xff] %vm1086_vm9, %v1070_v23 }
 0x180   : > { %v999_v11 = vpop.permute.xlu0 %998  ;;  %v997_v33 = vpop.permute.xlu1 %996 }
 0x181   : > { %v1062_v47 = vsel %vm1052_vm7, %v1986_v49, %v999_v11  ;;  %v1061_v59 = vsel %vm1052_vm7, %v1986_v49, %v997_v33 }
 0x182   : > { %v1079_v10 = vsel %vm1069_vm8, %v1062_v47, %v1037_v44  ;;  %v1078_v15 = vsel %vm1069_vm8, %v1061_v59, %v1037_v44 }
 0x183   : > { %1096 = vst.msk [vmem:[%s2311_s6 + $0x48] sm:$0xff] %vm1086_vm9, %v1079_v10  ;;  %1095 = vst.msk [vmem:[%s2311_s6 + $0x40] sm:$0xff] %vm1086_vm9, %v1078_v15 }
 0x184   : > { %v987_v30 = vpop.permute.xlu0 %986  ;;  %v985_v28 = vpop.permute.xlu1 %984 }
 0x185   : > { %v1056_v21 = vsel %vm1052_vm7, %v2028_v17, %v987_v30  ;;  %v1055_v40 = vsel %vm1052_vm7, %v2028_v17, %v985_v28 }
 0x186   : > { %v1073_v49 = vsel %vm1069_vm8, %v1056_v21, %v1031_v13  ;;  %v1072_v36 = vsel %vm1069_vm8, %v1055_v40, %v1031_v13 }
 0x187   : > { %1090 = vst.msk [vmem:[%s2311_s6 + $0x18] sm:$0xff] %vm1086_vm9, %v1073_v49  ;;  %1089 = vst.msk [vmem:[%s2311_s6 + $0x10] sm:$0xff] %vm1086_vm9, %v1072_v36 }
 0x188   : > { %v991_v34 = vpop.permute.xlu0 %990  ;;  %v989_v41 = vpop.permute.xlu1 %988 }
 0x189   : > { %v1058_v26 = vsel %vm1052_vm7, %v1996_v55, %v991_v34  ;;  %v1057_v62 = vsel %vm1052_vm7, %v1996_v55, %v989_v41 }
 0x18a   : > { %v1075_v17 = vsel %vm1069_vm8, %v1058_v26, %v1033_v31  ;;  %v1074_v50 = vsel %vm1069_vm8, %v1057_v62, %v1033_v31 }
 0x18b   : > { %1092 = vst.msk [vmem:[%s2311_s6 + $0x28] sm:$0xff] %vm1086_vm9, %v1075_v17  ;;  %1091 = vst.msk [vmem:[%s2311_s6 + $0x20] sm:$0xff] %vm1086_vm9, %v1074_v50 }
 0x18c   : > { %v1003_v4 = vpop.permute.xlu0 %1002  ;;  %v1001_v25 = vpop.permute.xlu1 %1000 }
 0x18d   : > { %v1064_v3 = vsel %vm1052_vm7, %v1993_v53, %v1003_v4  ;;  %v1063_v46 = vsel %vm1052_vm7, %v1993_v53, %v1001_v25 }
 0x18e   : > { %v1081_v55 = vsel %vm1069_vm8, %v1064_v3, %v1039_v6  ;;  %v1080_v2 = vsel %vm1069_vm8, %v1063_v46, %v1039_v6 }
 0x18f   : > { %1098 = vst.msk [vmem:[%s2311_s6 + $0x58] sm:$0xff] %vm1086_vm9, %v1081_v55  ;;  %1097 = vst.msk [vmem:[%s2311_s6 + $0x50] sm:$0xff] %vm1086_vm9, %v1080_v2 }
 0x190   : > { %v1007_v20 = vpop.permute.xlu0 %1006  ;;  %v1005_v27 = vpop.permute.xlu1 %1004 }
 0x191   : > { %v1066_v5 = vsel %vm1052_vm7, %v2000_v56, %v1007_v20 }
 0x194   : > { %v995_v48 = vpop.permute.xlu0 %994  ;;  %v993_v16 = vpop.permute.xlu1 %992 }
 0x195   : > { %v1060_v42 = vsel %vm1052_vm7, %v1975_v43, %v995_v48  ;;  %v1059_v14 = vsel %vm1052_vm7, %v1975_v43, %v993_v16  ;;  %v1065_v43 = vsel %vm1052_vm7, %v2000_v56, %v1005_v27 }
 0x196   : > { %v1077_v53 = vsel %vm1069_vm8, %v1060_v42, %v1035_v29  ;;  %v1076_v24 = vsel %vm1069_vm8, %v1059_v14, %v1035_v29 }
 0x197   : > { %1094 = vst.msk [vmem:[%s2311_s6 + $0x38] sm:$0xff] %vm1086_vm9, %v1077_v53  ;;  %1093 = vst.msk [vmem:[%s2311_s6 + $0x30] sm:$0xff] %vm1086_vm9, %v1076_v24 }
 0x198   : > { %v1011_v54 = vpop.permute.xlu0 %1010  ;;  %v1009_v58 = vpop.permute.xlu1 %1008 }
 0x199   : > { %v1068_v60 = vsel %vm1052_vm7, %v2003_v57, %v1011_v54  ;;  %v1067_v18 = vsel %vm1052_vm7, %v2003_v57, %v1009_v58 }
 0x19b   : > { %1109 = sbr.rel (!%p1910_p13) target bundleno = 457 (0x1c9), region = 82 }
 0x19c   : > { %v1043_v61 = vpop.permute.xlu0 %1042  ;;  %v1041_v12 = vpop.permute.xlu1 %1040 }
 0x19d   : > { %v1084_v37 = vsel %vm1069_vm8, %v1067_v18, %v1043_v61  ;;  %v1085_v19 = vsel %vm1069_vm8, %v1068_v60, %v1043_v61  ;;  %v1082_v38 = vsel %vm1069_vm8, %v1065_v43, %v1041_v12  ;;  %v1083_v8 = vsel %vm1069_vm8, %v1066_v5, %v1041_v12 }
 0x19e   : > { %1101 = vst.msk [vmem:[%s2311_s6 + $0x70] sm:$0xff] %vm1086_vm9, %v1084_v37  ;;  %1102 = vst.msk [vmem:[%s2311_s6 + $0x78] sm:$0xff] %vm1086_vm9, %v1085_v19 }
 0x19f   : > { %1099 = vst.msk [vmem:[%s2311_s6 + $0x60] sm:$0xff] %vm1086_vm9, %v1082_v38  ;;  %1100 = vst.msk [vmem:[%s2311_s6 + $0x68] sm:$0xff] %vm1086_vm9, %v1083_v8 }
 0x1a0   : > { %s2574_s8 = smov (!%p1112_p7, %s1111_s8), 2 }
 0x1a1   : > { %s1482_s20 = sshll.u32 %s2574_s8, 10 }
 0x1a2   : > { %p1485_p8 = scmp.eq.s32.totalorder %s1482_s20, 0 }
 0x1a3   : > { %s2400_s30 = sshrl.u32 (!%p1485_p8), %s2574_s8, 1 }
 0x1a4   : > { %1122 = sbr.rel (%p1485_p8) target bundleno = 457 (0x1c9), region = 86  ;;  %p1486_p9 = scmp.le.s32.totalorder (!%p1485_p8), %s2400_s30, 0 }
 0x1a9   : > { %1388 = sbr.rel (%p1486_p9) target bundleno = 440 (0x1b8), region = 170  ;;  %s2543_s22 = smov (!%p1486_p9), %s2396_s14 }
 0x1aa   : > { %s2544_s23 = smov (!%p1486_p9), %s2311_s6  ;;  %s2409_s13 = smov (!%p1486_p9), 0  }
 0x1ab   : > { %s2411_s27 = smov (!%p1486_p9), 0  }
 0x1ae LB: >> { %v1229_v56 = vld [vmem:[%s1774_s23] sm:$0xff]  ;;  %v1231_v57 = vld [vmem:[%s1774_s23 + $0x8] sm:$0xff]  ;;  %v1233_v51 = vld [vmem:[%s1774_s23 + $0x10] sm:$0xff]  ;;  %s1261_s7 = sadd.s32 1, %s1778_s13  ;;  %s1223_s27 = sadd.s32 1, %s1782_s27   ;;  %s1782_s27 = sphi %s2411_s27, %s1223_s27   ;;  %s1778_s13 = sphi %s2409_s13, %s2545_s13   ;;  %s1774_s23 = sphi %s2544_s23, %s1266_s23   ;;  %s1770_s22 = sphi %s2543_s22, %s1267_s22  }
 0x1af   : >> { %1230 = vst [vmem:[%s1770_s22] sm:$0xff] %v1229_v56  ;;  %1232 = vst [vmem:[%s1770_s22 + $0x8] sm:$0xff] %v1231_v57  ;;  %v1235_v32 = vld [vmem:[%s1774_s23 + $0x18] sm:$0xff]  ;;  %v1237_v9 = vld [vmem:[%s1774_s23 + $0x20] sm:$0xff]  ;;  %p1262_p10 = scmp.ge.s32.totalorder %s1261_s7, %s2400_s30  ;;  %p1222_p11 = scmp.ge.s32.totalorder %s1223_s27, %s2400_s30 }
 0x1b0   : >> { %1234 = vst [vmem:[%s1770_s22 + $0x18] sm:$0xff] %v1233_v51  ;;  %v1239_v63 = vld [vmem:[%s1774_s23 + $0x28] sm:$0xff]  ;;  %1236 = vst [vmem:[%s1770_s22 + $0x20] sm:$0xff] %v1235_v32  ;;  %v1241_v35 = vld [vmem:[%s1774_s23 + $0x30] sm:$0xff] }
 0x1b1   : >> { %1238 = vst [vmem:[%s1770_s22 + $0x30] sm:$0xff] %v1237_v9  ;;  %1240 = vst [vmem:[%s1770_s22 + $0x38] sm:$0xff] %v1239_v63  ;;  %v1243_v52 = vld [vmem:[%s1774_s23 + $0x38] sm:$0xff]  ;;  %v1245_v13 = vld [vmem:[%s1774_s23 + $0x40] sm:$0xff]  ;;  %s2576_s7 = smov (%p1262_p10, %s1261_s7), 0 }
 0x1b2   : >> { %1242 = vst [vmem:[%s1770_s22 + $0x48] sm:$0xff] %v1241_v35  ;;  %1244 = vst [vmem:[%s1770_s22 + $0x50] sm:$0xff] %v1243_v52  ;;  %v1247_v0 = vld [vmem:[%s1774_s23 + $0x48] sm:$0xff]  ;;  %v1249_v29 = vld [vmem:[%s1774_s23 + $0x50] sm:$0xff]  ;;  %s1487_s18 = sshll.u32 %s2576_s7, 4  ;;  %s2545_s13 = smov %s2576_s7 }
 0x1b3   : >> { %1246 = vst [vmem:[%s1770_s22 + $0x60] sm:$0xff] %v1245_v13  ;;  %v1251_v31 = vld [vmem:[%s1774_s23 + $0x58] sm:$0xff]  ;;  %1248 = vst [vmem:[%s1770_s22 + $0x68] sm:$0xff] %v1247_v0  ;;  %v1253_v6 = vld [vmem:[%s1774_s23 + $0x60] sm:$0xff]  ;;  %1225 = sbr.rel (!%p1222_p11) target bundleno = 430 (0x1ae), region = 176 }
 0x1b4   : >> { %1250 = vst [vmem:[%s1770_s22 + $0x78] sm:$0xff] %v1249_v29  ;;  %1252 = vst [vmem:[%s1770_s22 + $0x80] sm:$0xff] %v1251_v31  ;;  %v1255_v44 = vld [vmem:[%s1774_s23 + $0x68] sm:$0xff]  ;;  %v1257_v45 = vld [vmem:[%s1774_s23 + $0x70] sm:$0xff] }
 0x1b5   : >> { %1254 = vst [vmem:[%s1770_s22 + $0x90] sm:$0xff] %v1253_v6  ;;  %1256 = vst [vmem:[%s1770_s22 + $0x98] sm:$0xff] %v1255_v44  ;;  %v1259_v1 = vld [vmem:[%s1774_s23 + $0x78] sm:$0xff]  ;;  %s1266_s23 = scalar_lea.vmem %s2311_s6, %s1487_s18 [#allocation3]  }
 0x1b6   : >> { %1258 = vst [vmem:[%s1770_s22 + $0xa8] sm:$0xff] %v1257_v45  ;;  %1260 = vst [vmem:[%s1770_s22 + $0xb0] sm:$0xff] %v1259_v1  ;;  %s1267_s22 = scalar_lea.vmem %s2396_s14, %s1487_s18  }
 0x1b8 PF: > { %s2469_s15 = sand.u32 1, %s2574_s8   ;;  %s1503_s9 = sshll.u32 %s2400_s30, 4 }
 0x1b9   : > { %s2473_s10 = scalar_lea.vmem %s2311_s6, %s1503_s9 [#allocation3]   ;;  %s2476_s11 = scalar_lea.vmem %s2396_s14, %s1503_s9  }
 0x1ba   : > { %p1492_p12 = scmp.le.s32.totalorder %s2469_s15, 0 }
 0x1bb   : > { %s2546_s12 = smov (!%p1492_p12), %s2476_s11  ;;  %s2547_s20 = smov (!%p1492_p12), %s2473_s10 }
 0x1bc   : > { %1402 = sbr.rel (%p1492_p12) target bundleno = 457 (0x1c9), region = 181  ;;  %s2485_s22 = smov (!%p1492_p12), 0  }
 0x1bd   : > { %s2487_s23 = smov (!%p1492_p12), 0  }
 0x1c1 LB: >> { %v1284_v7 = vld [vmem:[%s1790_s20] sm:$0xff]  ;;  %v1286_v39 = vld [vmem:[%s1790_s20 + $0x10] sm:$0xff]  ;;  %s1300_s6 = sadd.s32 1, %s1794_s22  ;;  %s1278_s23 = sadd.s32 1, %s1798_s23   ;;  %s1798_s23 = sphi %s2487_s23, %s1278_s23   ;;  %s1794_s22 = sphi %s2485_s22, %s2548_s22   ;;  %s1790_s20 = sphi %s2547_s20, %s1305_s20   ;;  %s1786_s12 = sphi %s2546_s12, %s1306_s12  }
 0x1c2   : >> { %v1288_v22 = vld [vmem:[%s1790_s20 + $0x20] sm:$0xff]  ;;  %1285 = vst [vmem:[%s1786_s12] sm:$0xff] %v1284_v7  ;;  %1287 = vst [vmem:[%s1786_s12 + $0x18] sm:$0xff] %v1286_v39  ;;  %v1290_v23 = vld [vmem:[%s1790_s20 + $0x30] sm:$0xff]  ;;  %p1301_p13 = scmp.ge.s32.totalorder %s1300_s6, %s2469_s15  ;;  %p1277_p0 = scmp.ge.s32.totalorder %s1278_s23, %s2469_s15 }
 0x1c3   : >> { %1289 = vst [vmem:[%s1786_s12 + $0x30] sm:$0xff] %v1288_v22  ;;  %v1292_v11 = vld [vmem:[%s1790_s20 + $0x40] sm:$0xff]  ;;  %v1294_v33 = vld [vmem:[%s1790_s20 + $0x50] sm:$0xff]  ;;  %1291 = vst [vmem:[%s1786_s12 + $0x48] sm:$0xff] %v1290_v23 }
 0x1c4   : >> { %1293 = vst [vmem:[%s1786_s12 + $0x60] sm:$0xff] %v1292_v11  ;;  %1295 = vst [vmem:[%s1786_s12 + $0x78] sm:$0xff] %v1294_v33  ;;  %v1296_v47 = vld [vmem:[%s1790_s20 + $0x60] sm:$0xff]  ;;  %v1298_v59 = vld [vmem:[%s1790_s20 + $0x70] sm:$0xff]  ;;  %s2578_s6 = smov (%p1301_p13, %s1300_s6), 0  ;;  %1280 = sbr.rel (!%p1277_p0) target bundleno = 449 (0x1c1), region = 187 }
 0x1c5   : >> { %1297 = vst [vmem:[%s1786_s12 + $0x90] sm:$0xff] %v1296_v47  ;;  %1299 = vst [vmem:[%s1786_s12 + $0xa8] sm:$0xff] %v1298_v59  ;;  %s1493_s8 = sshll.u32 %s2578_s6, 3  ;;  %s2548_s22 = smov %s2578_s6 }
 0x1c6   : >> { %s1305_s20 = scalar_lea.vmem %s2473_s10, %s1493_s8 [#allocation3]   ;;  %s1306_s12 = scalar_lea.vmem %s2476_s11, %s1493_s8  }
 0x1c9 PF: > { %s15_s26 = sadd.s32 1, %s1766_s26   ;;  %s2549_s18 = smov %s1738_s19 }
 0x1ca   : > { %p12_p1 = scmp.ge.s32.totalorder %s15_s26, 6   ;;  %s2550_s19 = smov %s1906_s17 }
 0x1cb   : > { %s2551_s20 = smov %s1746_s21  ;;  %s2552_s21 = smov %s1903_s16 }
 0x1cc   : > { %s2553_s22 = smov %s1758_s24  ;;  %s2554_s23 = smov %s1762_s25 }
 0x1cd   : > { %s2555_s24 = smov %s2558_s28  ;;  %s2556_s25 = smov %s2562_s29 }
 0x1ce   :  { %14 = sbr.rel (!%p12_p1) target bundleno = 5 (0x5), region = 198 }

</bundles_post_ra>
